<compile_context>
chip_gen: v7x
topology: tpu7x:2x2x1
jax: 0.10.0
libtpu: 0.0.40
codegen_flags: <defaults>
</compile_context>

<pallas_src>
import jax
import jax.numpy as jnp
import numpy as np
from jax import lax
from jax.experimental import pallas as pl
from jax.experimental.pallas import tpu as pltpu

_LANE = 128
_SUBLANE = 8


def _round_up(x, m):
    return (x + m - 1) // m * m


def _vmem_capacity_bytes():
    try:
        return int(pltpu.get_tpu_info().vmem_capacity_bytes)
    except Exception:
        return 64 << 20  # conservative fallback: v7x per-TensorCore VMEM


def _padded_slab_bytes(p, e, itemsize):
    """VMEM bytes of one (p, e) slab after (sublane, lane) tiling/padding."""
    sublane_pack = _SUBLANE * max(1, 4 // itemsize)  # 8 for f32, 16 for bf16
    return _round_up(p, sublane_pack) * _round_up(e, _LANE) * itemsize


def _per_row_vmem_bytes(p, e, itemsize):
    """Per-batch-row VMEM: 2 inputs x 2 pipeline buffers + f32 temporaries."""
    in_bufs = 2 * 2 * _padded_slab_bytes(p, e, itemsize)
    lane_e = _round_up(e, _LANE) * 4
    lane_p = _round_up(p, _LANE) * 4
    if p <= 32:
        # Sliced kernel: only (TB, E)/(TB, P)-sized f32 temporaries stay live.
        temps = 6 * lane_e + 4 * lane_p
    else:
        # Vectorized kernel: f32 upcasts + (TB, P, E) products.
        temps = 4 * _padded_slab_bytes(p, e, 4) + 2 * lane_e + 2 * lane_p
    return in_bufs + temps


def _choose_batch_tile(b, p, e, itemsize):
    """Pick the batch (leading/sublane) tile from this chip's VMEM budget."""
    budget = _vmem_capacity_bytes() // 4  # headroom (v7x has only 64 MiB)
    per_row = _per_row_vmem_bytes(p, e, itemsize)
    tb_cap = max(_SUBLANE, (budget // per_row) // _SUBLANE * _SUBLANE)
    tb = min(512, tb_cap)  # >512 rows/step buys nothing; more steps keep
                           # DMA of step i+1 overlapped with compute of step i
    if b <= tb:
        return b           # single block covering the whole (small) batch
    tb = max(_SUBLANE, min(tb, (b // _SUBLANE) * _SUBLANE))
    if pl.cdiv(b, tb) < 4:  # target >=4 grid steps for pipeline overlap
        tb = max(_SUBLANE, min(tb, _round_up(pl.cdiv(b, 4), _SUBLANE)))
    steps = pl.cdiv(b, tb)
    if steps > 1 and steps % 2 == 1:  # even step count: v7x megacore balance
        tb = max(_SUBLANE, _round_up(pl.cdiv(b, steps + 1), _SUBLANE))
    return tb


def _make_kernel(batch_size, block_batch, max_paths, embedding_size):
    p, e = max_paths, embedding_size

    def kernel(u_ref, a_ref, o_ref):
        # u_ref / a_ref: (TB, P, E) tiles in the natural input layout.
        # o_ref: (TB, 1) output tile.
        # Ragged tail: rows >= batch_size hold unspecified data (their output
        # writes are dropped by Pallas); mask the score so exp never sees it.
        row0 = pl.program_id(0) * block_batch
        rows = row0 + lax.broadcasted_iota(jnp.int32, (block_batch, 1), 0)
        valid = rows < batch_size

        if p <= 32:
            # Sliced formulation: never materializes a (TB, P, E) f32 product.
            score_cols = []
            for j in range(p):
                uj = u_ref[:, j, :].astype(jnp.float32)          # (TB, E)
                aj = a_ref[:, j, :].astype(jnp.float32)
                s = jnp.sum(uj * aj, axis=-1, keepdims=True)     # (TB, 1)
                score_cols.append(jnp.where(valid, s, 0.0))
            m = score_cols[0]
            for s in score_cols[1:]:
                m = jnp.maximum(m, s)                            # (TB, 1)
            ex_cols = [jnp.exp(s - m) for s in score_cols]       # P x (TB, 1)
            z = ex_cols[0]
            for x in ex_cols[1:]:
                z = z + x                                        # (TB, 1)
            up = ex_cols[0] * u_ref[:, 0, :].astype(jnp.float32)  # (TB, E)
            ap = ex_cols[0] * a_ref[:, 0, :].astype(jnp.float32)
            for j in range(1, p):
                up = up + ex_cols[j] * u_ref[:, j, :].astype(jnp.float32)
                ap = ap + ex_cols[j] * a_ref[:, j, :].astype(jnp.float32)
        else:
            # Lane-dense case (module defaults P=E=128): whole-tile vector path.
            u = u_ref[...].astype(jnp.float32)                   # (TB, P, E)
            a = a_ref[...].astype(jnp.float32)
            score = jnp.sum(u * a, axis=-1)                      # (TB, P)
            score = jnp.where(valid, score, 0.0)
            m = jnp.max(score, axis=-1, keepdims=True)           # (TB, 1)
            ex = jnp.exp(score - m)                              # (TB, P)
            z = jnp.sum(ex, axis=-1, keepdims=True)              # (TB, 1)
            w = ex[:, :, None]                                   # (TB, P, 1)
            up = jnp.sum(w * u, axis=1)                          # (TB, E)
            ap = jnp.sum(w * a, axis=1)

        # Deferred softmax normalization: out = <up', ap'> / Z^2,
        # one exact reciprocal per batch row.
        dot = jnp.sum(up * ap, axis=-1, keepdims=True)           # (TB, 1)
        inv_z = pl.reciprocal(z, approx=False)
        o_ref[...] = dot * inv_z * inv_z

    return kernel


def path_gather(link_user_embeddings, link_answer_embeddings, *,
                max_paths, embedding_size, batch_tile=None):
    """Pallas implementation of PathGather.forward.

    Args:
      link_user_embeddings:   (B*max_paths, embedding_size) float32/bfloat16
      link_answer_embeddings: (B*max_paths, embedding_size) same dtype
    Returns:
      (B,) float32
    """
    n, e = link_user_embeddings.shape
    assert e == embedding_size
    assert n % max_paths == 0
    p = max_paths
    b = n // p

    # (B*P, E) -> (B, P, E) is a free, contiguous reshape; the kernel consumes
    # the natural layout (no host-side transpose, no jnp.pad of the inputs).
    u = link_user_embeddings.reshape(b, p, e)
    a = link_answer_embeddings.reshape(b, p, e)

    itemsize = jnp.dtype(link_user_embeddings.dtype).itemsize
    if batch_tile is not None:
        if batch_tile >= b:
            tb = b
        else:
            assert batch_tile % _SUBLANE == 0, (
                "batch_tile must be a multiple of 8 when smaller than the batch")
            tb = batch_tile
    else:
        tb = _choose_batch_tile(b, p, e, itemsize)

    grid = (pl.cdiv(b, tb),)

    per_row = _per_row_vmem_bytes(p, e, itemsize)
    est = tb * per_row + (2 << 20)
    vmem_limit = int(min(_vmem_capacity_bytes() * 7 // 8,
                         max(2 * est, 32 << 20)))

    out = pl.pallas_call(
        _make_kernel(b, tb, p, e),
        out_shape=jax.ShapeDtypeStruct((b, 1), jnp.float32),
        grid_spec=pltpu.PrefetchScalarGridSpec(
            num_scalar_prefetch=0,
            grid=grid,
            in_specs=[
                pl.BlockSpec((tb, p, e), lambda i: (i, 0, 0)),
                pl.BlockSpec((tb, p, e), lambda i: (i, 0, 0)),
            ],
            out_specs=pl.BlockSpec((tb, 1), lambda i: (i, 0)),
        ),
        compiler_params=pltpu.CompilerParams(
            dimension_semantics=("parallel",),
            vmem_limit_bytes=vmem_limit,
        ),
    )(u, a)
    return out[:, 0]


def _reference(u_flat, a_flat, max_paths, embedding_size):
    b = u_flat.shape[0] // max_paths
    u = u_flat.reshape(b, max_paths, embedding_size).astype(jnp.float32)
    a = a_flat.reshape(b, max_paths, embedding_size).astype(jnp.float32)
    score = jnp.sum(u * a, axis=-1)
    attn = jax.nn.softmax(score, axis=1)[:, :, None]
    up = jnp.sum(attn * u, axis=1)
    ap = jnp.sum(attn * a, axis=1)
    return jnp.sum(up * ap, axis=-1)


if __name__ == "__main__":
    key = jax.random.PRNGKey(0)
    k1, k2, k3, k4, k5, k6 = jax.random.split(key, 6)

    # --- Test 1: shipped sizes, tiny batch (single full-array block) ---
    EMBEDDING_SIZE, MAX_PATHS, BATCH = 32, 8, 2
    u1 = jax.random.normal(k1, (BATCH * MAX_PATHS, EMBEDDING_SIZE), jnp.float32)
    a1 = jax.random.normal(k2, (BATCH * MAX_PATHS, EMBEDDING_SIZE), jnp.float32)
    o1 = jax.block_until_ready(
        path_gather(u1, a1, max_paths=MAX_PATHS, embedding_size=EMBEDDING_SIZE))
    r1 = _reference(u1, a1, MAX_PATHS, EMBEDDING_SIZE)
    np.testing.assert_allclose(np.asarray(o1), np.asarray(r1), rtol=1e-5, atol=1e-5)

    # --- Test 2: multi-step grid with ragged tail (300 = 4*64 + 44), no padding ---
    BATCH2 = 300
    u2 = jax.random.normal(k3, (BATCH2 * MAX_PATHS, EMBEDDING_SIZE), jnp.float32)
    a2 = jax.random.normal(k4, (BATCH2 * MAX_PATHS, EMBEDDING_SIZE), jnp.float32)
    o2 = jax.block_until_ready(
        path_gather(u2, a2, max_paths=MAX_PATHS, embedding_size=EMBEDDING_SIZE,
                    batch_tile=64))
    r2 = _reference(u2, a2, MAX_PATHS, EMBEDDING_SIZE)
    np.testing.assert_allclose(np.asarray(o2), np.asarray(r2), rtol=1e-5, atol=1e-5)

    # --- Test 3: module defaults (P=E=128) -> lane-dense vectorized path ---
    E3, P3, B3 = 128, 128, 16
    u3 = jax.random.normal(k5, (B3 * P3, E3), jnp.float32)
    a3 = jax.random.normal(k6, (B3 * P3, E3), jnp.float32)
    o3 = jax.block_until_ready(
        path_gather(u3, a3, max_paths=P3, embedding_size=E3))
    r3 = _reference(u3, a3, P3, E3)
    np.testing.assert_allclose(np.asarray(o3), np.asarray(r3), rtol=2e-5, atol=2e-4)

    print("KERNEL_OK")
</pallas_src>

<mosaic_0001>
module attributes {stable_mosaic.version = 11 : i64} {
  func.func @kernel(%arg0: i32, %arg1: memref<2x8x32xf32, #tpu.memory_space<vmem>>, %arg2: memref<2x8x32xf32, #tpu.memory_space<vmem>>, %arg3: memref<2x1xf32, #tpu.memory_space<vmem>>) attributes {dimension_semantics = [#tpu.dimension_semantics<parallel>], iteration_bounds = array<i64: 1>, scalar_prefetch = 0 : i64, scratch_operands = 0 : i64, tpu.core_type = #tpu.core_type<tc>, window_params = [{transform_indices = @transform_0, window_bounds = array<i64: 2, 8, 32>}, {transform_indices = @transform_1, window_bounds = array<i64: 2, 8, 32>}, {transform_indices = @transform_2, window_bounds = array<i64: 2, 1>}]} {
    %c2_i32 = arith.constant 2 : i32
    %0 = arith.muli %arg0, %c2_i32 : i32
    %1 = tpu.iota {dimensions = array<i32: 0>} : vector<2x1xi32>
    %2 = vector.broadcast %0 : i32 to vector<2x1xi32>
    %3 = arith.addi %2, %1 : vector<2x1xi32>
    %c2_i32_0 = arith.constant 2 : i32
    %4 = vector.broadcast %c2_i32_0 : i32 to vector<2x1xi32>
    %5 = arith.cmpi slt, %3, %4 : vector<2x1xi32>
    %c0 = arith.constant 0 : index
    %c0_1 = arith.constant 0 : index
    %c0_2 = arith.constant 0 : index
    %6 = vector.load %arg1[%c0, %c0_1, %c0_2] : memref<2x8x32xf32, #tpu.memory_space<vmem>>, vector<2x1x32xf32>
    %7 = vector.shape_cast %6 : vector<2x1x32xf32> to vector<2x32xf32>
    %c0_3 = arith.constant 0 : index
    %c0_4 = arith.constant 0 : index
    %c0_5 = arith.constant 0 : index
    %8 = vector.load %arg2[%c0_3, %c0_4, %c0_5] : memref<2x8x32xf32, #tpu.memory_space<vmem>>, vector<2x1x32xf32>
    %9 = vector.shape_cast %8 : vector<2x1x32xf32> to vector<2x32xf32>
    %10 = arith.mulf %7, %9 : vector<2x32xf32>
    %cst = arith.constant dense<0.000000e+00> : vector<2xf32>
    %11 = vector.multi_reduction <add>, %10, %cst [1] : vector<2x32xf32> to vector<2xf32>
    %12 = vector.shape_cast %11 : vector<2xf32> to vector<2x1xf32>
    %cst_6 = arith.constant 0.000000e+00 : f32
    %13 = vector.broadcast %cst_6 : f32 to vector<2x1xf32>
    %14 = arith.select %5, %12, %13 : vector<2x1xi1>, vector<2x1xf32>
    %c0_7 = arith.constant 0 : index
    %c1 = arith.constant 1 : index
    %c0_8 = arith.constant 0 : index
    %15 = vector.load %arg1[%c0_7, %c1, %c0_8] : memref<2x8x32xf32, #tpu.memory_space<vmem>>, vector<2x1x32xf32>
    %16 = vector.shape_cast %15 : vector<2x1x32xf32> to vector<2x32xf32>
    %c0_9 = arith.constant 0 : index
    %c1_10 = arith.constant 1 : index
    %c0_11 = arith.constant 0 : index
    %17 = vector.load %arg2[%c0_9, %c1_10, %c0_11] : memref<2x8x32xf32, #tpu.memory_space<vmem>>, vector<2x1x32xf32>
    %18 = vector.shape_cast %17 : vector<2x1x32xf32> to vector<2x32xf32>
    %19 = arith.mulf %16, %18 : vector<2x32xf32>
    %cst_12 = arith.constant dense<0.000000e+00> : vector<2xf32>
    %20 = vector.multi_reduction <add>, %19, %cst_12 [1] : vector<2x32xf32> to vector<2xf32>
    %21 = vector.shape_cast %20 : vector<2xf32> to vector<2x1xf32>
    %cst_13 = arith.constant 0.000000e+00 : f32
    %22 = vector.broadcast %cst_13 : f32 to vector<2x1xf32>
    %23 = arith.select %5, %21, %22 : vector<2x1xi1>, vector<2x1xf32>
    %c0_14 = arith.constant 0 : index
    %c2 = arith.constant 2 : index
    %c0_15 = arith.constant 0 : index
    %24 = vector.load %arg1[%c0_14, %c2, %c0_15] : memref<2x8x32xf32, #tpu.memory_space<vmem>>, vector<2x1x32xf32>
    %25 = vector.shape_cast %24 : vector<2x1x32xf32> to vector<2x32xf32>
    %c0_16 = arith.constant 0 : index
    %c2_17 = arith.constant 2 : index
    %c0_18 = arith.constant 0 : index
    %26 = vector.load %arg2[%c0_16, %c2_17, %c0_18] : memref<2x8x32xf32, #tpu.memory_space<vmem>>, vector<2x1x32xf32>
    %27 = vector.shape_cast %26 : vector<2x1x32xf32> to vector<2x32xf32>
    %28 = arith.mulf %25, %27 : vector<2x32xf32>
    %cst_19 = arith.constant dense<0.000000e+00> : vector<2xf32>
    %29 = vector.multi_reduction <add>, %28, %cst_19 [1] : vector<2x32xf32> to vector<2xf32>
    %30 = vector.shape_cast %29 : vector<2xf32> to vector<2x1xf32>
    %cst_20 = arith.constant 0.000000e+00 : f32
    %31 = vector.broadcast %cst_20 : f32 to vector<2x1xf32>
    %32 = arith.select %5, %30, %31 : vector<2x1xi1>, vector<2x1xf32>
    %c0_21 = arith.constant 0 : index
    %c3 = arith.constant 3 : index
    %c0_22 = arith.constant 0 : index
    %33 = vector.load %arg1[%c0_21, %c3, %c0_22] : memref<2x8x32xf32, #tpu.memory_space<vmem>>, vector<2x1x32xf32>
    %34 = vector.shape_cast %33 : vector<2x1x32xf32> to vector<2x32xf32>
    %c0_23 = arith.constant 0 : index
    %c3_24 = arith.constant 3 : index
    %c0_25 = arith.constant 0 : index
    %35 = vector.load %arg2[%c0_23, %c3_24, %c0_25] : memref<2x8x32xf32, #tpu.memory_space<vmem>>, vector<2x1x32xf32>
    %36 = vector.shape_cast %35 : vector<2x1x32xf32> to vector<2x32xf32>
    %37 = arith.mulf %34, %36 : vector<2x32xf32>
    %cst_26 = arith.constant dense<0.000000e+00> : vector<2xf32>
    %38 = vector.multi_reduction <add>, %37, %cst_26 [1] : vector<2x32xf32> to vector<2xf32>
    %39 = vector.shape_cast %38 : vector<2xf32> to vector<2x1xf32>
    %cst_27 = arith.constant 0.000000e+00 : f32
    %40 = vector.broadcast %cst_27 : f32 to vector<2x1xf32>
    %41 = arith.select %5, %39, %40 : vector<2x1xi1>, vector<2x1xf32>
    %c0_28 = arith.constant 0 : index
    %c4 = arith.constant 4 : index
    %c0_29 = arith.constant 0 : index
    %42 = vector.load %arg1[%c0_28, %c4, %c0_29] : memref<2x8x32xf32, #tpu.memory_space<vmem>>, vector<2x1x32xf32>
    %43 = vector.shape_cast %42 : vector<2x1x32xf32> to vector<2x32xf32>
    %c0_30 = arith.constant 0 : index
    %c4_31 = arith.constant 4 : index
    %c0_32 = arith.constant 0 : index
    %44 = vector.load %arg2[%c0_30, %c4_31, %c0_32] : memref<2x8x32xf32, #tpu.memory_space<vmem>>, vector<2x1x32xf32>
    %45 = vector.shape_cast %44 : vector<2x1x32xf32> to vector<2x32xf32>
    %46 = arith.mulf %43, %45 : vector<2x32xf32>
    %cst_33 = arith.constant dense<0.000000e+00> : vector<2xf32>
    %47 = vector.multi_reduction <add>, %46, %cst_33 [1] : vector<2x32xf32> to vector<2xf32>
    %48 = vector.shape_cast %47 : vector<2xf32> to vector<2x1xf32>
    %cst_34 = arith.constant 0.000000e+00 : f32
    %49 = vector.broadcast %cst_34 : f32 to vector<2x1xf32>
    %50 = arith.select %5, %48, %49 : vector<2x1xi1>, vector<2x1xf32>
    %c0_35 = arith.constant 0 : index
    %c5 = arith.constant 5 : index
    %c0_36 = arith.constant 0 : index
    %51 = vector.load %arg1[%c0_35, %c5, %c0_36] : memref<2x8x32xf32, #tpu.memory_space<vmem>>, vector<2x1x32xf32>
    %52 = vector.shape_cast %51 : vector<2x1x32xf32> to vector<2x32xf32>
    %c0_37 = arith.constant 0 : index
    %c5_38 = arith.constant 5 : index
    %c0_39 = arith.constant 0 : index
    %53 = vector.load %arg2[%c0_37, %c5_38, %c0_39] : memref<2x8x32xf32, #tpu.memory_space<vmem>>, vector<2x1x32xf32>
    %54 = vector.shape_cast %53 : vector<2x1x32xf32> to vector<2x32xf32>
    %55 = arith.mulf %52, %54 : vector<2x32xf32>
    %cst_40 = arith.constant dense<0.000000e+00> : vector<2xf32>
    %56 = vector.multi_reduction <add>, %55, %cst_40 [1] : vector<2x32xf32> to vector<2xf32>
    %57 = vector.shape_cast %56 : vector<2xf32> to vector<2x1xf32>
    %cst_41 = arith.constant 0.000000e+00 : f32
    %58 = vector.broadcast %cst_41 : f32 to vector<2x1xf32>
    %59 = arith.select %5, %57, %58 : vector<2x1xi1>, vector<2x1xf32>
    %c0_42 = arith.constant 0 : index
    %c6 = arith.constant 6 : index
    %c0_43 = arith.constant 0 : index
    %60 = vector.load %arg1[%c0_42, %c6, %c0_43] : memref<2x8x32xf32, #tpu.memory_space<vmem>>, vector<2x1x32xf32>
    %61 = vector.shape_cast %60 : vector<2x1x32xf32> to vector<2x32xf32>
    %c0_44 = arith.constant 0 : index
    %c6_45 = arith.constant 6 : index
    %c0_46 = arith.constant 0 : index
    %62 = vector.load %arg2[%c0_44, %c6_45, %c0_46] : memref<2x8x32xf32, #tpu.memory_space<vmem>>, vector<2x1x32xf32>
    %63 = vector.shape_cast %62 : vector<2x1x32xf32> to vector<2x32xf32>
    %64 = arith.mulf %61, %63 : vector<2x32xf32>
    %cst_47 = arith.constant dense<0.000000e+00> : vector<2xf32>
    %65 = vector.multi_reduction <add>, %64, %cst_47 [1] : vector<2x32xf32> to vector<2xf32>
    %66 = vector.shape_cast %65 : vector<2xf32> to vector<2x1xf32>
    %cst_48 = arith.constant 0.000000e+00 : f32
    %67 = vector.broadcast %cst_48 : f32 to vector<2x1xf32>
    %68 = arith.select %5, %66, %67 : vector<2x1xi1>, vector<2x1xf32>
    %c0_49 = arith.constant 0 : index
    %c7 = arith.constant 7 : index
    %c0_50 = arith.constant 0 : index
    %69 = vector.load %arg1[%c0_49, %c7, %c0_50] : memref<2x8x32xf32, #tpu.memory_space<vmem>>, vector<2x1x32xf32>
    %70 = vector.shape_cast %69 : vector<2x1x32xf32> to vector<2x32xf32>
    %c0_51 = arith.constant 0 : index
    %c7_52 = arith.constant 7 : index
    %c0_53 = arith.constant 0 : index
    %71 = vector.load %arg2[%c0_51, %c7_52, %c0_53] : memref<2x8x32xf32, #tpu.memory_space<vmem>>, vector<2x1x32xf32>
    %72 = vector.shape_cast %71 : vector<2x1x32xf32> to vector<2x32xf32>
    %73 = arith.mulf %70, %72 : vector<2x32xf32>
    %cst_54 = arith.constant dense<0.000000e+00> : vector<2xf32>
    %74 = vector.multi_reduction <add>, %73, %cst_54 [1] : vector<2x32xf32> to vector<2xf32>
    %75 = vector.shape_cast %74 : vector<2xf32> to vector<2x1xf32>
    %cst_55 = arith.constant 0.000000e+00 : f32
    %76 = vector.broadcast %cst_55 : f32 to vector<2x1xf32>
    %77 = arith.select %5, %75, %76 : vector<2x1xi1>, vector<2x1xf32>
    %78 = arith.maximumf %14, %23 : vector<2x1xf32>
    %79 = arith.maximumf %78, %32 : vector<2x1xf32>
    %80 = arith.maximumf %79, %41 : vector<2x1xf32>
    %81 = arith.maximumf %80, %50 : vector<2x1xf32>
    %82 = arith.maximumf %81, %59 : vector<2x1xf32>
    %83 = arith.maximumf %82, %68 : vector<2x1xf32>
    %84 = arith.maximumf %83, %77 : vector<2x1xf32>
    %85 = arith.subf %14, %84 : vector<2x1xf32>
    %86 = math.exp %85 : vector<2x1xf32>
    %87 = arith.subf %23, %84 : vector<2x1xf32>
    %88 = math.exp %87 : vector<2x1xf32>
    %89 = arith.subf %32, %84 : vector<2x1xf32>
    %90 = math.exp %89 : vector<2x1xf32>
    %91 = arith.subf %41, %84 : vector<2x1xf32>
    %92 = math.exp %91 : vector<2x1xf32>
    %93 = arith.subf %50, %84 : vector<2x1xf32>
    %94 = math.exp %93 : vector<2x1xf32>
    %95 = arith.subf %59, %84 : vector<2x1xf32>
    %96 = math.exp %95 : vector<2x1xf32>
    %97 = arith.subf %68, %84 : vector<2x1xf32>
    %98 = math.exp %97 : vector<2x1xf32>
    %99 = arith.subf %77, %84 : vector<2x1xf32>
    %100 = math.exp %99 : vector<2x1xf32>
    %101 = arith.addf %86, %88 : vector<2x1xf32>
    %102 = arith.addf %101, %90 : vector<2x1xf32>
    %103 = arith.addf %102, %92 : vector<2x1xf32>
    %104 = arith.addf %103, %94 : vector<2x1xf32>
    %105 = arith.addf %104, %96 : vector<2x1xf32>
    %106 = arith.addf %105, %98 : vector<2x1xf32>
    %107 = arith.addf %106, %100 : vector<2x1xf32>
    %c0_56 = arith.constant 0 : index
    %c0_57 = arith.constant 0 : index
    %c0_58 = arith.constant 0 : index
    %108 = vector.load %arg1[%c0_56, %c0_57, %c0_58] : memref<2x8x32xf32, #tpu.memory_space<vmem>>, vector<2x1x32xf32>
    %109 = vector.shape_cast %108 : vector<2x1x32xf32> to vector<2x32xf32>
    %110 = vector.broadcast %86 : vector<2x1xf32> to vector<2x32xf32>
    %111 = arith.mulf %110, %109 : vector<2x32xf32>
    %c0_59 = arith.constant 0 : index
    %c0_60 = arith.constant 0 : index
    %c0_61 = arith.constant 0 : index
    %112 = vector.load %arg2[%c0_59, %c0_60, %c0_61] : memref<2x8x32xf32, #tpu.memory_space<vmem>>, vector<2x1x32xf32>
    %113 = vector.shape_cast %112 : vector<2x1x32xf32> to vector<2x32xf32>
    %114 = vector.broadcast %86 : vector<2x1xf32> to vector<2x32xf32>
    %115 = arith.mulf %114, %113 : vector<2x32xf32>
    %c0_62 = arith.constant 0 : index
    %c1_63 = arith.constant 1 : index
    %c0_64 = arith.constant 0 : index
    %116 = vector.load %arg1[%c0_62, %c1_63, %c0_64] : memref<2x8x32xf32, #tpu.memory_space<vmem>>, vector<2x1x32xf32>
    %117 = vector.shape_cast %116 : vector<2x1x32xf32> to vector<2x32xf32>
    %118 = vector.broadcast %88 : vector<2x1xf32> to vector<2x32xf32>
    %119 = arith.mulf %118, %117 : vector<2x32xf32>
    %120 = arith.addf %111, %119 : vector<2x32xf32>
    %c0_65 = arith.constant 0 : index
    %c1_66 = arith.constant 1 : index
    %c0_67 = arith.constant 0 : index
    %121 = vector.load %arg2[%c0_65, %c1_66, %c0_67] : memref<2x8x32xf32, #tpu.memory_space<vmem>>, vector<2x1x32xf32>
    %122 = vector.shape_cast %121 : vector<2x1x32xf32> to vector<2x32xf32>
    %123 = vector.broadcast %88 : vector<2x1xf32> to vector<2x32xf32>
    %124 = arith.mulf %123, %122 : vector<2x32xf32>
    %125 = arith.addf %115, %124 : vector<2x32xf32>
    %c0_68 = arith.constant 0 : index
    %c2_69 = arith.constant 2 : index
    %c0_70 = arith.constant 0 : index
    %126 = vector.load %arg1[%c0_68, %c2_69, %c0_70] : memref<2x8x32xf32, #tpu.memory_space<vmem>>, vector<2x1x32xf32>
    %127 = vector.shape_cast %126 : vector<2x1x32xf32> to vector<2x32xf32>
    %128 = vector.broadcast %90 : vector<2x1xf32> to vector<2x32xf32>
    %129 = arith.mulf %128, %127 : vector<2x32xf32>
    %130 = arith.addf %120, %129 : vector<2x32xf32>
    %c0_71 = arith.constant 0 : index
    %c2_72 = arith.constant 2 : index
    %c0_73 = arith.constant 0 : index
    %131 = vector.load %arg2[%c0_71, %c2_72, %c0_73] : memref<2x8x32xf32, #tpu.memory_space<vmem>>, vector<2x1x32xf32>
    %132 = vector.shape_cast %131 : vector<2x1x32xf32> to vector<2x32xf32>
    %133 = vector.broadcast %90 : vector<2x1xf32> to vector<2x32xf32>
    %134 = arith.mulf %133, %132 : vector<2x32xf32>
    %135 = arith.addf %125, %134 : vector<2x32xf32>
    %c0_74 = arith.constant 0 : index
    %c3_75 = arith.constant 3 : index
    %c0_76 = arith.constant 0 : index
    %136 = vector.load %arg1[%c0_74, %c3_75, %c0_76] : memref<2x8x32xf32, #tpu.memory_space<vmem>>, vector<2x1x32xf32>
    %137 = vector.shape_cast %136 : vector<2x1x32xf32> to vector<2x32xf32>
    %138 = vector.broadcast %92 : vector<2x1xf32> to vector<2x32xf32>
    %139 = arith.mulf %138, %137 : vector<2x32xf32>
    %140 = arith.addf %130, %139 : vector<2x32xf32>
    %c0_77 = arith.constant 0 : index
    %c3_78 = arith.constant 3 : index
    %c0_79 = arith.constant 0 : index
    %141 = vector.load %arg2[%c0_77, %c3_78, %c0_79] : memref<2x8x32xf32, #tpu.memory_space<vmem>>, vector<2x1x32xf32>
    %142 = vector.shape_cast %141 : vector<2x1x32xf32> to vector<2x32xf32>
    %143 = vector.broadcast %92 : vector<2x1xf32> to vector<2x32xf32>
    %144 = arith.mulf %143, %142 : vector<2x32xf32>
    %145 = arith.addf %135, %144 : vector<2x32xf32>
    %c0_80 = arith.constant 0 : index
    %c4_81 = arith.constant 4 : index
    %c0_82 = arith.constant 0 : index
    %146 = vector.load %arg1[%c0_80, %c4_81, %c0_82] : memref<2x8x32xf32, #tpu.memory_space<vmem>>, vector<2x1x32xf32>
    %147 = vector.shape_cast %146 : vector<2x1x32xf32> to vector<2x32xf32>
    %148 = vector.broadcast %94 : vector<2x1xf32> to vector<2x32xf32>
    %149 = arith.mulf %148, %147 : vector<2x32xf32>
    %150 = arith.addf %140, %149 : vector<2x32xf32>
    %c0_83 = arith.constant 0 : index
    %c4_84 = arith.constant 4 : index
    %c0_85 = arith.constant 0 : index
    %151 = vector.load %arg2[%c0_83, %c4_84, %c0_85] : memref<2x8x32xf32, #tpu.memory_space<vmem>>, vector<2x1x32xf32>
    %152 = vector.shape_cast %151 : vector<2x1x32xf32> to vector<2x32xf32>
    %153 = vector.broadcast %94 : vector<2x1xf32> to vector<2x32xf32>
    %154 = arith.mulf %153, %152 : vector<2x32xf32>
    %155 = arith.addf %145, %154 : vector<2x32xf32>
    %c0_86 = arith.constant 0 : index
    %c5_87 = arith.constant 5 : index
    %c0_88 = arith.constant 0 : index
    %156 = vector.load %arg1[%c0_86, %c5_87, %c0_88] : memref<2x8x32xf32, #tpu.memory_space<vmem>>, vector<2x1x32xf32>
    %157 = vector.shape_cast %156 : vector<2x1x32xf32> to vector<2x32xf32>
    %158 = vector.broadcast %96 : vector<2x1xf32> to vector<2x32xf32>
    %159 = arith.mulf %158, %157 : vector<2x32xf32>
    %160 = arith.addf %150, %159 : vector<2x32xf32>
    %c0_89 = arith.constant 0 : index
    %c5_90 = arith.constant 5 : index
    %c0_91 = arith.constant 0 : index
    %161 = vector.load %arg2[%c0_89, %c5_90, %c0_91] : memref<2x8x32xf32, #tpu.memory_space<vmem>>, vector<2x1x32xf32>
    %162 = vector.shape_cast %161 : vector<2x1x32xf32> to vector<2x32xf32>
    %163 = vector.broadcast %96 : vector<2x1xf32> to vector<2x32xf32>
    %164 = arith.mulf %163, %162 : vector<2x32xf32>
    %165 = arith.addf %155, %164 : vector<2x32xf32>
    %c0_92 = arith.constant 0 : index
    %c6_93 = arith.constant 6 : index
    %c0_94 = arith.constant 0 : index
    %166 = vector.load %arg1[%c0_92, %c6_93, %c0_94] : memref<2x8x32xf32, #tpu.memory_space<vmem>>, vector<2x1x32xf32>
    %167 = vector.shape_cast %166 : vector<2x1x32xf32> to vector<2x32xf32>
    %168 = vector.broadcast %98 : vector<2x1xf32> to vector<2x32xf32>
    %169 = arith.mulf %168, %167 : vector<2x32xf32>
    %170 = arith.addf %160, %169 : vector<2x32xf32>
    %c0_95 = arith.constant 0 : index
    %c6_96 = arith.constant 6 : index
    %c0_97 = arith.constant 0 : index
    %171 = vector.load %arg2[%c0_95, %c6_96, %c0_97] : memref<2x8x32xf32, #tpu.memory_space<vmem>>, vector<2x1x32xf32>
    %172 = vector.shape_cast %171 : vector<2x1x32xf32> to vector<2x32xf32>
    %173 = vector.broadcast %98 : vector<2x1xf32> to vector<2x32xf32>
    %174 = arith.mulf %173, %172 : vector<2x32xf32>
    %175 = arith.addf %165, %174 : vector<2x32xf32>
    %c0_98 = arith.constant 0 : index
    %c7_99 = arith.constant 7 : index
    %c0_100 = arith.constant 0 : index
    %176 = vector.load %arg1[%c0_98, %c7_99, %c0_100] : memref<2x8x32xf32, #tpu.memory_space<vmem>>, vector<2x1x32xf32>
    %177 = vector.shape_cast %176 : vector<2x1x32xf32> to vector<2x32xf32>
    %178 = vector.broadcast %100 : vector<2x1xf32> to vector<2x32xf32>
    %179 = arith.mulf %178, %177 : vector<2x32xf32>
    %180 = arith.addf %170, %179 : vector<2x32xf32>
    %c0_101 = arith.constant 0 : index
    %c7_102 = arith.constant 7 : index
    %c0_103 = arith.constant 0 : index
    %181 = vector.load %arg2[%c0_101, %c7_102, %c0_103] : memref<2x8x32xf32, #tpu.memory_space<vmem>>, vector<2x1x32xf32>
    %182 = vector.shape_cast %181 : vector<2x1x32xf32> to vector<2x32xf32>
    %183 = vector.broadcast %100 : vector<2x1xf32> to vector<2x32xf32>
    %184 = arith.mulf %183, %182 : vector<2x32xf32>
    %185 = arith.addf %175, %184 : vector<2x32xf32>
    %186 = arith.mulf %180, %185 : vector<2x32xf32>
    %cst_104 = arith.constant dense<0.000000e+00> : vector<2xf32>
    %187 = vector.multi_reduction <add>, %186, %cst_104 [1] : vector<2x32xf32> to vector<2xf32>
    %188 = vector.shape_cast %187 : vector<2xf32> to vector<2x1xf32>
    %189 = tpu.reciprocal %107 : vector<2x1xf32> -> vector<2x1xf32>
    %190 = arith.mulf %188, %189 : vector<2x1xf32>
    %191 = arith.mulf %190, %189 : vector<2x1xf32>
    %c0_105 = arith.constant 0 : index
    %c0_106 = arith.constant 0 : index
    %192 = vector.load %arg3[%c0_105, %c0_106] : memref<2x1xf32, #tpu.memory_space<vmem>>, vector<2x1xf32>
    tpu.vector_store %arg3[%c0_105, %c0_106], %191 {strides = array<i32>} : memref<2x1xf32, #tpu.memory_space<vmem>>, vector<2x1xf32>,
    return
  }
  func.func @transform_0(%arg0: i32) -> (i32, i32, i32) {
    %c0_i32 = arith.constant 0 : i32
    %c0_i32_0 = arith.constant 0 : i32
    %c0_i32_1 = arith.constant 0 : i32
    return %arg0, %c0_i32, %c0_i32_0 : i32, i32, i32
  }
  func.func @transform_1(%arg0: i32) -> (i32, i32, i32) {
    %c0_i32 = arith.constant 0 : i32
    %c0_i32_0 = arith.constant 0 : i32
    %c0_i32_1 = arith.constant 0 : i32
    return %arg0, %c0_i32, %c0_i32_0 : i32, i32, i32
  }
  func.func @transform_2(%arg0: i32) -> (i32, i32) {
    %c0_i32 = arith.constant 0 : i32
    %c0_i32_0 = arith.constant 0 : i32
    return %arg0, %c0_i32 : i32, i32
  }
}

</mosaic_0001>

<bundles_post_ra>
// kernel: tpu_custom_call.1
= control target key start
LH: loop header
LB: loop body
LE: loop exit
PB: predicated region body
PF: predicated region fallthrough
CT: control target
= control target key end

     0   :  { %7 = vsyncpa [#allocation3], 0  ;;  %s535_s0 = inlined_call_operand.hbm [shape: f32[2,8,32], index: 0, kind: input, shape index: {}]   ;;  %s536_s1 = inlined_call_operand.hbm [shape: f32[2,8,32], index: 1, kind: input, shape index: {}]   ;;  %s537_s2 = inlined_call_operand.vmem [shape: f32[2,1], index: 2, kind: output, shape index: {}]  }
   0x1   :  { %8 = vsyncpa [#allocation5], 0  ;;  %s400_s9 = smov [#allocation2]   ;;  %s352_s13 = scalar_lea.hbm %s535_s0, 256 }
   0x2   :  { %s14_s10 = sshll.u32 %s400_s9, 4  ;;  %p353_p0 = scmp.ne.s32.totalorder %s535_s0, %s352_s13  ;;  %s15_s10 = int_to_ptr.vmem [resolvable:$true] %s14_s10 }
   0x3   :  { %p356_p1 = scmp.lt.u32.totalorder %s352_s13, %s535_s0 }
   0x5   :  { %p358_p2 = pnand %p356_p1, %p353_p0 }
   0x7   :  { %361 = shalt.err (!%p358_p2)
}
   0x8   :  { %s362_s18 = scalar_lea.vmem %s15_s10, 256  ;;  %p367_p4 = scmp.lt.s32.totalorder %s15_s10, %s15_s10 }
   0x9   :  { %p363_p3 = scmp.ne.s32.totalorder %s15_s10, %s362_s18  ;;  %p368_p5 = scmp.lt.s32.totalorder %s362_s18, %s362_s18 }
   0xb   :  { %p369_p6 = por %p368_p5, %p367_p4 }
   0xd   :  { %p370_p7 = pnand %p369_p6, %p363_p3 }
   0xf   :  { %373 = shalt.err (!%p370_p7)
}
  0x10   :  { %s401_s19 = smov 128   ;;  %s402_s20 = smov 8  }
  0x11   :  { %20 = dma.hbm_to_vmem [thread:$0]  %s535_s0, 256, %s15_s10, [#allocation3], %s401_s19, %s401_s19, %s402_s20  }
  0x12   :  { %s403_s23 = smov [#allocation4]   ;;  %s374_s27 = scalar_lea.hbm %s536_s1, 256 }
  0x13   :  { %s26_s24 = sshll.u32 %s403_s23, 4  ;;  %p375_p8 = scmp.ne.s32.totalorder %s536_s1, %s374_s27  ;;  %s27_s24 = int_to_ptr.vmem [resolvable:$true] %s26_s24 }
  0x14   :  { %p378_p9 = scmp.lt.u32.totalorder %s374_s27, %s536_s1 }
  0x16   :  { %p380_p10 = pnand %p378_p9, %p375_p8 }
  0x18   :  { %383 = shalt.err (!%p380_p10)
}
  0x19   :  { %s384_s4 = scalar_lea.vmem %s27_s24, 256  ;;  %p389_p12 = scmp.lt.s32.totalorder %s27_s24, %s27_s24 }
  0x1a   :  { %p385_p11 = scmp.ne.s32.totalorder %s27_s24, %s384_s4  ;;  %p390_p13 = scmp.lt.s32.totalorder %s384_s4, %s384_s4 }
  0x1c   :  { %p391_p0 = por %p390_p13, %p389_p12 }
  0x1e   :  { %p392_p1 = pnand %p391_p0, %p385_p11 }
  0x20   :  { %395 = shalt.err (!%p392_p1)
}
  0x21   :  { %32 = dma.hbm_to_vmem [thread:$0]  %s536_s1, 256, %s27_s24, [#allocation5], %s401_s19, %s401_s19, %s402_s20  }
  0x22   :  { %396 = dma.done.wait [#allocation3], 256  }
  0x23   :  { %397 = vsyncadd [#allocation3], 4294967040 }
  0x24   :  { %398 = dma.done.wait [#allocation5], 256  }
  0x25   :  { %399 = vsyncadd [#allocation5], 4294967040  ;;  %v45_v0 = vld [vmem:[#allocation2] sm:$0x1]  ;;  %v46_v1 = vld [vmem:[#allocation2 + $0x8] sm:$0x1] }
  0x26   :  { %v47_v2 = vld [vmem:[#allocation4] sm:$0x1]  ;;  %v48_v3 = vld [vmem:[#allocation4 + $0x8] sm:$0x1]  ;;  %v207_v4 = vrot.slane %v46_v1, 7  ;;  %vm54_vm0 = vcmask 1041409  }
  0x27   :  { %v77_v5 = vld [vmem:[#allocation2 + $0x2] sm:$0x1]  ;;  %v49_v6 = vmul.f32 %v47_v2, %v45_v0  ;;  %v50_v7 = vmul.f32 %v48_v3, %v46_v1  ;;  %v213_v8 = vrot.slane %v48_v3, 7  ;;  %v78_v9 = vld [vmem:[#allocation2 + $0xa] sm:$0x1]  ;;  %vm57_vm1 = vcmask 254976  }
  0x28   :  { %v79_v10 = vld [vmem:[#allocation4 + $0x2] sm:$0x1]  ;;  %v444_v11 = vsel %vm54_vm0, %v207_v4, %v45_v0  ;;  %v80_v12 = vld [vmem:[#allocation4 + $0xa] sm:$0x1]  ;;  %v233_v14 = vrot.slane %v78_v9, 7  ;;  %vm322_vm3 = vcmask 1024  }
  0x29   :  { %v81_v13 = vmul.f32 %v79_v10, %v77_v5  ;;  %v62_v15 = vld [vmem:[#allocation2 + $0x1] sm:$0x1]  ;;  %v53_v16 = vrot.slane %v50_v7, 7  ;;  %v447_v17 = vsel %vm54_vm0, %v213_v8, %v47_v2  ;;  %v82_v18 = vmul.f32 %v80_v12, %v78_v9  ;;  %v63_v20 = vld [vmem:[#allocation2 + $0x9] sm:$0x1] }
  0x2a   :  { %v240_v19 = vrot.slane %v80_v12, 7  ;;  %v64_v21 = vld [vmem:[#allocation4 + $0x1] sm:$0x1]  ;;  %v450_v22 = vsel %vm54_vm0, %v233_v14, %v77_v5  ;;  %v65_v23 = vld [vmem:[#allocation4 + $0x9] sm:$0x1]  ;;  %v219_v25 = vrot.slane %v63_v20, 7 }
  0x2b   :  { %v66_v24 = vmul.f32 %v64_v21, %v62_v15  ;;  %v92_v26 = vld [vmem:[#allocation2 + $0x3] sm:$0x1]  ;;  %v55_v27 = vsel %vm54_vm0, %v53_v16, %v49_v6  ;;  %v85_v28 = vrot.slane %v82_v18, 7  ;;  %v67_v30 = vmul.f32 %v65_v23, %v63_v20  ;;  %v93_v31 = vld [vmem:[#allocation2 + $0xb] sm:$0x1] }
  0x2c   :  { %v454_v29 = vsel %vm54_vm0, %v240_v19, %v79_v10  ;;  %v94_v32 = vld [vmem:[#allocation4 + $0x3] sm:$0x1]  ;;  %v58_v33 = vsel %vm57_vm1, %v55_v27, 0.0  ;;  %v458_v34 = vsel %vm54_vm0, %v219_v25, %v62_v15  ;;  %v226_v35 = vrot.slane %v65_v23, 7  ;;  %v95_v36 = vld [vmem:[#allocation4 + $0xb] sm:$0x1] }
  0x2d   :  { %v96_v37 = vmul.f32 %v94_v32, %v92_v26  ;;  %v107_v38 = vld [vmem:[#allocation2 + $0x4] sm:$0x1]  ;;  %59 = vadd.xlane.f32.xlu0 %v58_v33  ;;  %v86_v39 = vsel %vm54_vm0, %v85_v28, %v81_v13  ;;  %v70_v40 = vrot.slane %v67_v30, 7  ;;  %v97_v41 = vmul.f32 %v95_v36, %v93_v31  ;;  %v108_v43 = vld [vmem:[#allocation2 + $0xc] sm:$0x1] }
  0x2e   :  { %v247_v42 = vrot.slane %v93_v31, 7  ;;  %v109_v44 = vld [vmem:[#allocation4 + $0x4] sm:$0x1]  ;;  %v88_v45 = vsel %vm57_vm1, %v86_v39, 0.0  ;;  %v463_v46 = vsel %vm54_vm0, %v226_v35, %v64_v21  ;;  %v254_v47 = vrot.slane %v95_v36, 7 }
  0x2f   :  { %v110_v48 = vld [vmem:[#allocation4 + $0xc] sm:$0x1]  ;;  %v111_v49 = vmul.f32 %v109_v44, %v107_v38  ;;  %v122_v50 = vld [vmem:[#allocation2 + $0x5] sm:$0x1]  ;;  %89 = vadd.xlane.f32.xlu1 %v88_v45  ;;  %v71_v51 = vsel %vm54_vm0, %v70_v40, %v66_v24  ;;  %v100_v52 = vrot.slane %v97_v41, 7  ;;  %v261_v59 = vrot.slane %v108_v43, 7 }
  0x30   :  { %v467_v53 = vsel %vm54_vm0, %v247_v42, %v92_v26  ;;  %v112_v54 = vmul.f32 %v110_v48, %v108_v43  ;;  %v123_v55 = vld [vmem:[#allocation2 + $0xd] sm:$0x1]  ;;  %v124_v56 = vld [vmem:[#allocation4 + $0x5] sm:$0x1]  ;;  %v73_v57 = vsel %vm57_vm1, %v71_v51, 0.0  ;;  %v471_v58 = vsel %vm54_vm0, %v254_v47, %v94_v32 }
  0x31   :  { %v268_v60 = vrot.slane %v110_v48, 7  ;;  %v125_v61 = vld [vmem:[#allocation4 + $0xd] sm:$0x1]  ;;  %74 = vadd.xlane.f32.xlu0 %v73_v57  ;;  %v101_v62 = vsel %vm54_vm0, %v100_v52, %v96_v37  ;;  %v126_v0 = vmul.f32 %v124_v56, %v122_v50  ;;  %v137_v2 = vld [vmem:[#allocation2 + $0x6] sm:$0x1]  ;;  %v476_v5 = vsel %vm54_vm0, %v261_v59, %v107_v38 }
  0x32   :  { %v115_v63 = vrot.slane %v112_v54, 7  ;;  %v127_v1 = vmul.f32 %v125_v61, %v123_v55  ;;  %v138_v3 = vld [vmem:[#allocation2 + $0xe] sm:$0x1]  ;;  %v103_v4 = vsel %vm57_vm1, %v101_v62, 0.0  ;;  %v275_v7 = vrot.slane %v123_v55, 7 }
  0x33   :  { %v479_v6 = vsel %vm54_vm0, %v268_v60, %v109_v44  ;;  %v139_v8 = vld [vmem:[#allocation4 + $0x6] sm:$0x1]  ;;  %v140_v9 = vld [vmem:[#allocation4 + $0xe] sm:$0x1]  ;;  %104 = vadd.xlane.f32.xlu1 %v103_v4  ;;  %v282_v13 = vrot.slane %v125_v61, 7  ;;  %v289_v21 = vrot.slane %v138_v3, 7  ;;  %v40_v45 = vlaneseq }
  0x34   :  { %v116_v10 = vsel %vm54_vm0, %v115_v63, %v111_v49  ;;  %v130_v12 = vrot.slane %v127_v1, 7  ;;  %v141_v14 = vmul.f32 %v139_v8, %v137_v2  ;;  %v152_v15 = vld [vmem:[#allocation2 + $0x7] sm:$0x1]  ;;  %v153_v16 = vld [vmem:[#allocation2 + $0xf] sm:$0x1]  ;;  %v484_v19 = vsel %vm54_vm0, %v275_v7, %v122_v50 }
  0x35   :  { %v118_v18 = vsel %vm57_vm1, %v116_v10, 0.0  ;;  %v142_v20 = vmul.f32 %v140_v9, %v138_v3  ;;  %v154_v23 = vld [vmem:[#allocation4 + $0x7] sm:$0x1]  ;;  %v155_v24 = vld [vmem:[#allocation4 + $0xf] sm:$0x1]  ;;  %v488_v26 = vsel %vm54_vm0, %v282_v13, %v124_v56  ;;  %v296_v27 = vrot.slane %v140_v9, 7 }
  0x36   :  { %119 = vadd.xlane.f32.xlu0 %v118_v18  ;;  %v131_v25 = vsel %vm54_vm0, %v130_v12, %v126_v0  ;;  %v156_v28 = vmul.f32 %v154_v23, %v152_v15  ;;  %v492_v32 = vsel %vm54_vm0, %v289_v21, %v137_v2  ;;  %v157_v33 = vmul.f32 %v155_v24, %v153_v16 }
  0x37   :  { %v133_v30 = vsel %vm57_vm1, %v131_v25, 0.0  ;;  %v145_v31 = vrot.slane %v142_v20, 7  ;;  %v495_v35 = vsel %vm54_vm0, %v296_v27, %v139_v8  ;;  %v303_v41 = vrot.slane %v153_v16, 7 }
  0x38   :  { %134 = vadd.xlane.f32.xlu1 %v133_v30  ;;  %v160_v37 = vrot.slane %v157_v33, 7  ;;  %v310_v42 = vrot.slane %v155_v24, 7  ;;  %v41_v47 = vshrl.u32 %v40_v45, 7 }
  0x39   :  { %v146_v36 = vsel %vm54_vm0, %v145_v31, %v141_v14  ;;  %v502_v43 = vsel %vm54_vm0, %v303_v41, %v152_v15 }
  0x3a   :  { %v148_v38 = vsel %vm57_vm1, %v146_v36, 0.0  ;;  %v161_v39 = vsel %vm54_vm0, %v160_v37, %v156_v28  ;;  %v505_v44 = vsel %vm54_vm0, %v310_v42, %v154_v23  ;;  %vm44_vm2 = vcmp.lt.s32.totalorder %v41_v47, 2 }
  0x3b   :  { %149 = vadd.xlane.f32.xlu0 %v148_v38  ;;  %v163_v40 = vsel %vm57_vm1, %v161_v39, 0.0 }
  0x3c   :  { %164 = vadd.xlane.f32.xlu1 %v163_v40 }
  0xba   :  { %v60_v48 = vpop.xlane.xlu0 %59 }
  0xbb   :  { %v61_v51 = vsel %vm44_vm2, %v60_v48, 0.0 }
  0xbc   :  { %v90_v49 = vpop.xlane.xlu1 %89 }
  0xbd   :  { %v91_v56 = vsel %vm44_vm2, %v90_v49, 0.0 }
  0xbe   :  { %v75_v50 = vpop.xlane.xlu0 %74 }
  0xbf   :  { %v76_v52 = vsel %vm44_vm2, %v75_v50, 0.0 }
  0xc0   :  { %v167_v54 = vmax.f32 %v61_v51, %v76_v52  ;;  %v105_v55 = vpop.xlane.xlu1 %104 }
  0xc1   :  { %v106_v57 = vsel %vm44_vm2, %v105_v55, 0.0 }
  0xc2   :  { %v168_v59 = vmax.f32 %v167_v54, %v91_v56 }
  0xc3   :  { %v120_v60 = vpop.xlane.xlu0 %119 }
  0xc4   :  { %v121_v61 = vsel %vm44_vm2, %v120_v60, 0.0  ;;  %v169_v62 = vmax.f32 %v168_v59, %v106_v57 }
  0xc5   :  { %v135_v63 = vpop.xlane.xlu1 %134 }
  0xc6   :  { %v136_v0 = vsel %vm44_vm2, %v135_v63, 0.0  ;;  %v170_v1 = vmax.f32 %v169_v62, %v121_v61 }
  0xc8   :  { %v150_v2 = vpop.xlane.xlu0 %149  ;;  %v171_v3 = vmax.f32 %v170_v1, %v136_v0 }
  0xc9   :  { %v151_v4 = vsel %vm44_vm2, %v150_v2, 0.0  ;;  %v165_v7 = vpop.xlane.xlu1 %164 }
  0xca   :  { %v172_v8 = vmax.f32 %v171_v3, %v151_v4  ;;  %v166_v9 = vsel %vm44_vm2, %v165_v7, 0.0 }
  0xcc   :  { %v173_v10 = vmax.f32 %v172_v8, %v166_v9 }
  0xce   :  { %v174_v12 = vsub.f32 %v61_v51, %v173_v10  ;;  %v177_v13 = vsub.f32 %v76_v52, %v173_v10  ;;  %v180_v14 = vsub.f32 %v91_v56, %v173_v10  ;;  %v183_v15 = vsub.f32 %v106_v57, %v173_v10 }
  0xcf   :  { %v186_v16 = vsub.f32 %v121_v61, %v173_v10  ;;  %v189_v24 = vsub.f32 %v136_v0, %v173_v10  ;;  %v192_v27 = vsub.f32 %v151_v4, %v173_v10  ;;  %v195_v30 = vsub.f32 %v166_v9, %v173_v10 }
  0xd0   :  { %v175_v18 = vmul.f32 1.442695, %v174_v12  ;;  %v178_v20 = vmul.f32 1.442695, %v177_v13  ;;  %v181_v21 = vmul.f32 1.442695, %v180_v14 }
  0xd1   :  { %v184_v23 = vmul.f32 1.442695, %v183_v15  ;;  %v187_v25 = vmul.f32 1.442695, %v186_v16  ;;  %v190_v28 = vmul.f32 1.442695, %v189_v24 }
  0xd2   :  { %334 = vpow2.f32 %v175_v18  ;;  %v193_v31 = vmul.f32 1.442695, %v192_v27  ;;  %v196_v33 = vmul.f32 1.442695, %v195_v30 }
  0xd3   :  { %336 = vpow2.f32 %v178_v20 }
  0xd4   :  { %338 = vpow2.f32 %v181_v21 }
  0xd5   :  { %340 = vpow2.f32 %v184_v23 }
  0xd6   :  { %342 = vpow2.f32 %v187_v25 }
  0xd7   :  { %344 = vpow2.f32 %v190_v28 }
  0xd8   :  { %346 = vpow2.f32 %v193_v31 }
  0xd9   :  { %348 = vpow2.f32 %v196_v33 }
  0xdc   :  { %v335_v36 = vpop.eup %334 }
  0xdd   :  { %v337_v37 = vpop.eup %336  ;;  %v210_v38 = vmul.f32 %v335_v36, %v444_v11  ;;  %v216_v39 = vmul.f32 %v335_v36, %v447_v17 }
  0xde   :  { %v339_v40 = vpop.eup %338  ;;  %v222_v41 = vmul.f32 %v337_v37, %v458_v34  ;;  %v229_v42 = vmul.f32 %v337_v37, %v463_v46  ;;  %v198_v45 = vadd.f32 %v337_v37, %v335_v36 }
  0xdf   :  { %v341_v47 = vpop.eup %340  ;;  %v236_v50 = vmul.f32 %v339_v40, %v450_v22  ;;  %v243_v51 = vmul.f32 %v339_v40, %v454_v29 }
  0xe0   :  { %v223_v48 = vadd.f32 %v222_v41, %v210_v38  ;;  %v230_v49 = vadd.f32 %v229_v42, %v216_v39  ;;  %v343_v52 = vpop.eup %342  ;;  %v199_v54 = vadd.f32 %v339_v40, %v198_v45  ;;  %v250_v11 = vmul.f32 %v341_v47, %v467_v53 }
  0xe1   :  { %v257_v17 = vmul.f32 %v341_v47, %v471_v58  ;;  %v345_v57 = vpop.eup %344  ;;  %v264_v60 = vmul.f32 %v343_v52, %v476_v5  ;;  %v271_v61 = vmul.f32 %v343_v52, %v479_v6 }
  0xe2   :  { %v237_v55 = vadd.f32 %v236_v50, %v223_v48  ;;  %v244_v56 = vadd.f32 %v243_v51, %v230_v49  ;;  %v200_v34 = vadd.f32 %v341_v47, %v199_v54  ;;  %v347_v62 = vpop.eup %346  ;;  %v278_v0 = vmul.f32 %v345_v57, %v484_v19 }
  0xe3   :  { %v285_v1 = vmul.f32 %v345_v57, %v488_v26  ;;  %v349_v2 = vpop.eup %348  ;;  %v292_v4 = vmul.f32 %v347_v62, %v492_v32  ;;  %v299_v7 = vmul.f32 %v347_v62, %v495_v35 }
  0xe4   :  { %v251_v59 = vadd.f32 %v250_v11, %v237_v55  ;;  %v258_v46 = vadd.f32 %v257_v17, %v244_v56  ;;  %v201_v22 = vadd.f32 %v343_v52, %v200_v34  ;;  %v306_v6 = vmul.f32 %v349_v2, %v502_v43 }
  0xe5   :  { %v313_v10 = vmul.f32 %v349_v2, %v505_v44 }
  0xe6   :  { %v265_v63 = vadd.f32 %v264_v60, %v251_v59  ;;  %v272_v29 = vadd.f32 %v271_v61, %v258_v46  ;;  %v202_v53 = vadd.f32 %v345_v57, %v201_v22 }
  0xe8   :  { %v279_v3 = vadd.f32 %v278_v0, %v265_v63  ;;  %v286_v58 = vadd.f32 %v285_v1, %v272_v29  ;;  %v203_v8 = vadd.f32 %v347_v62, %v202_v53 }
  0xea   :  { %v293_v5 = vadd.f32 %v292_v4, %v279_v3  ;;  %v300_v9 = vadd.f32 %v299_v7, %v286_v58  ;;  %v204_v12 = vadd.f32 %v349_v2, %v203_v8 }
  0xec   :  { %v307_v13 = vadd.f32 %v306_v6, %v293_v5  ;;  %v314_v19 = vadd.f32 %v313_v10, %v300_v9  ;;  %350 = vrcp.f32 %v204_v12 }
  0xee   :  { %v315_v14 = vmul.f32 %v314_v19, %v307_v13 }
  0xf0   :  { %v316_v26 = vsel %vm57_vm1, %v315_v14, 0.0 }
  0xf1   :  { %317 = vadd.xlane.f32.xlu0 %v316_v26 }
  0xf6   :  { %v351_v15 = vpop.eup %350 }
 0x17e   :  { %v318_v16 = vpop.xlane.xlu0 %317 }
 0x17f   :  { %v320_v32 = vmul.f32 %v351_v15, %v318_v16 }
 0x181   :  { %v321_v35 = vmul.f32 %v351_v15, %v320_v32 }
 0x183   :  { %323 = vst.msk [vmem:[%s537_s2] sm:$0x3] %vm322_vm3, %v321_v35 }
 0x184   :  { %328 = vsyncpa [#allocation3], 1 }
 0x185   :  { %329 = vsyncpa [#allocation5], 1 }

</bundles_post_ra>
